<compile_context>
chip_gen: v5e
topology: v5e:2x2
jax: 0.10.0
libtpu: 0.0.40
codegen_flags: <defaults>
</compile_context>

<pallas_src>
import jax
import jax.numpy as jnp
from jax.experimental import pallas as pl
from jax.experimental.pallas import tpu as pltpu


def gcn_agg_kernel(a_ref, xw_ref, b_ref, o_ref):
    # a_ref: [TM, TK] bf16   xw_ref: [TK, FP] bf16   b_ref: [1, FP] f32
    # o_ref: [TM, FP] f32 -- block index constant over k => VMEM-resident
    #                        accumulator; no scratch needed.
    k = pl.program_id(1)

    @pl.when(k == 0)
    def _init():
        o_ref[...] = jnp.zeros_like(o_ref)

    o_ref[...] += jnp.dot(a_ref[...], xw_ref[...],
                          preferred_element_type=jnp.float32)

    @pl.when(k == pl.num_programs(1) - 1)
    def _finalize():
        o_ref[...] += b_ref[...]


def _round_up(v, m):
    return ((v + m - 1) // m) * m


def gcn_forward(x, edge_index, weight, bias):
    """GCNConv forward.

    x:          [N, in_channels]  float32
    edge_index: [2, E]            int32 (row 0 = source, row 1 = destination)
    weight:     [out_channels, in_channels] float32
    bias:       [out_channels]    float32
    returns:    [N, out_channels] float32
    """
    n, _ = x.shape
    out_c = weight.shape[0]

    # --- plain-JAX glue: gcn_norm (add self loops + symmetric normalization) ---
    self_loops = jnp.arange(n, dtype=edge_index.dtype)
    src = jnp.concatenate([edge_index[0], self_loops])
    dst = jnp.concatenate([edge_index[1], self_loops])
    ew = jnp.ones_like(src, dtype=jnp.float32)

    deg = jnp.zeros((n,), jnp.float32).at[dst].add(ew)        # degree at destination
    deg_inv_sqrt = jnp.where(deg > 0, jax.lax.rsqrt(deg), 0.0)
    norm = deg_inv_sqrt[src] * ew * deg_inv_sqrt[dst]

    # Tile sizes: 512-class row/K tiles (256 for tiny graphs), lane tile = full
    # padded feature dim so A_hat streams from HBM exactly once.
    tm = tk = min(512, _round_up(max(n, 1), 256))
    f_p = _round_up(out_c, 128)
    n_p = _round_up(n, tm)
    # Note (v7x): with >=2 row tiles the "parallel" i axis shards across both
    # TensorCores; for single-tile graphs the second core is idle anyway.

    # Dense normalized adjacency scattered DIRECTLY into a padded bf16 buffer
    # (duplicate edges sum, like scatter_add). Avoids the f32 zeros + scatter +
    # separate cast round trip (~10*N_p^2 bytes of HBM traffic).
    a_bf = jnp.zeros((n_p, n_p), jnp.bfloat16).at[dst, src].add(
        norm.astype(jnp.bfloat16))

    # X @ W^T hoisted out of the aggregation loop; pad straight into bf16.
    xw = jnp.dot(x, weight.T, preferred_element_type=jnp.float32)
    xw_bf = jnp.zeros((n_p, f_p), jnp.bfloat16).at[:n, :out_c].set(
        xw.astype(jnp.bfloat16))
    b_p = jnp.zeros((1, f_p), jnp.float32).at[0, :out_c].set(bias)

    grid = (n_p // tm, n_p // tk)   # (dst row tiles, src/K reduction tiles)

    cost = pl.CostEstimate(
        flops=2 * n_p * n_p * f_p,
        transcendentals=0,
        bytes_accessed=a_bf.size * 2 + xw_bf.size * 2 * grid[0]
        + b_p.size * 4 + n_p * f_p * 4,
    )

    # VMEM working-set estimate (double-buffered inputs/outputs); only raise
    # the scoped limit when we exceed the smallest default (v5e: 16 MiB).
    vmem_est = (2 * tm * tk * 2        # A_hat tiles, bf16
                + 2 * tk * f_p * 2     # XW tiles, bf16
                + 2 * tm * f_p * 4     # output tiles, f32
                + 2 * f_p * 4)         # bias
    cp_kwargs = dict(dimension_semantics=("parallel", "arbitrary"))
    if vmem_est > 12 * 1024 * 1024:
        cp_kwargs["vmem_limit_bytes"] = min(vmem_est + (8 << 20), 48 << 20)

    out_padded = pl.pallas_call(
        gcn_agg_kernel,
        out_shape=jax.ShapeDtypeStruct((n_p, f_p), jnp.float32),
        grid_spec=pltpu.PrefetchScalarGridSpec(
            num_scalar_prefetch=0,
            grid=grid,
            in_specs=[
                pl.BlockSpec((tm, tk), lambda i, k: (i, k)),    # A_hat tile
                pl.BlockSpec((tk, f_p), lambda i, k: (k, 0)),   # XW tile (full lanes)
                pl.BlockSpec((1, f_p), lambda i, k: (0, 0)),    # bias (resident)
            ],
            out_specs=pl.BlockSpec((tm, f_p), lambda i, k: (i, 0)),
        ),
        compiler_params=pltpu.CompilerParams(**cp_kwargs),
        cost_estimate=cost,
    )(a_bf, xw_bf, b_p)

    return out_padded[:n, :out_c]


def gcn_reference(x, edge_index, weight, bias):
    """Pure-JAX f32 reference for correctness check."""
    n = x.shape[0]
    self_loops = jnp.arange(n, dtype=edge_index.dtype)
    src = jnp.concatenate([edge_index[0], self_loops])
    dst = jnp.concatenate([edge_index[1], self_loops])
    ew = jnp.ones_like(src, dtype=jnp.float32)
    deg = jnp.zeros((n,), jnp.float32).at[dst].add(ew)
    dis = jnp.where(deg > 0, jax.lax.rsqrt(deg), 0.0)
    norm = dis[src] * ew * dis[dst]
    xw = x @ weight.T
    out = jnp.zeros((n, weight.shape[0]), jnp.float32).at[dst].add(norm[:, None] * xw[src])
    return out + bias[None, :]


if __name__ == "__main__":
    def run_case(key, n, in_c, out_c, e):
        k_x, k_e, k_w = jax.random.split(key, 3)
        x = jax.random.normal(k_x, (n, in_c), dtype=jnp.float32)
        edge_index = jax.random.randint(k_e, (2, e), 0, n, dtype=jnp.int32)
        # xavier_uniform_ on weight [out_c, in_c]; bias zeros (GCNConv default).
        bound = (6.0 / (in_c + out_c)) ** 0.5
        weight = jax.random.uniform(k_w, (out_c, in_c), jnp.float32, -bound, bound)
        bias = jnp.zeros((out_c,), jnp.float32)

        out = jax.block_until_ready(gcn_forward(x, edge_index, weight, bias))
        ref = gcn_reference(x, edge_index, weight, bias)
        assert out.shape == (n, out_c)
        # bf16-cast A_hat / XW with f32 accumulation -> relaxed tolerance vs f32 ref.
        assert jnp.allclose(out, ref, atol=5e-2, rtol=5e-2), \
            float(jnp.max(jnp.abs(out - ref)))

    key = jax.random.PRNGKey(0)
    k1, k2, k3 = jax.random.split(key, 3)
    run_case(k1, n=16, in_c=8, out_c=32, e=40)        # tiny: single grid step
    run_case(k2, n=300, in_c=12, out_c=160, e=600)    # padded N, wide (256-lane) features
    run_case(k3, n=600, in_c=12, out_c=64, e=1200)    # (2, 2) grid: multi-tile rows + K accumulation

    print("KERNEL_OK")
</pallas_src>

<mosaic_0001>
module attributes {stable_mosaic.version = 11 : i64} {
  func.func @gcn_agg_kernel(%arg0: i32, %arg1: i32, %arg2: memref<256x256xbf16, #tpu.memory_space<vmem>>, %arg3: memref<256x128xbf16, #tpu.memory_space<vmem>>, %arg4: memref<1x128xf32, #tpu.memory_space<vmem>>, %arg5: memref<256x128xf32, #tpu.memory_space<vmem>>) attributes {dimension_semantics = [#tpu.dimension_semantics<parallel>, #tpu.dimension_semantics<arbitrary>], iteration_bounds = array<i64: 1, 1>, scalar_prefetch = 0 : i64, scratch_operands = 0 : i64, tpu.core_type = #tpu.core_type<tc>, window_params = [{transform_indices = @transform_0, window_bounds = array<i64: 256, 256>}, {transform_indices = @transform_1, window_bounds = array<i64: 256, 128>}, {pipeline_mode = #tpu.pipeline_mode<synchronous>, transform_indices = @transform_2, window_bounds = array<i64: 1, 128>}, {transform_indices = @transform_3, window_bounds = array<i64: 256, 128>}]} {
    %c0_i32 = arith.constant 0 : i32
    %0 = arith.cmpi eq, %arg1, %c0_i32 : i32
    %1 = arith.extui %0 : i1 to i32
    %c0_i32_0 = arith.constant 0 : i32
    %2 = arith.cmpi ne, %1, %c0_i32_0 : i32
    scf.if %2 {
      %cst_10 = arith.constant 0.000000e+00 : f32
      %12 = vector.broadcast %cst_10 : f32 to vector<256x128xf32>
      %c0_11 = arith.constant 0 : index
      %c0_12 = arith.constant 0 : index
      %13 = vector.load %arg5[%c0_11, %c0_12] : memref<256x128xf32, #tpu.memory_space<vmem>>, vector<256x128xf32>
      tpu.vector_store %arg5[%c0_11, %c0_12], %12 {strides = array<i32>} : memref<256x128xf32, #tpu.memory_space<vmem>>, vector<256x128xf32>,
    } else {
    }
    %c0 = arith.constant 0 : index
    %c0_1 = arith.constant 0 : index
    %3 = vector.load %arg5[%c0, %c0_1] : memref<256x128xf32, #tpu.memory_space<vmem>>, vector<256x128xf32>
    %c0_2 = arith.constant 0 : index
    %c0_3 = arith.constant 0 : index
    %4 = vector.load %arg2[%c0_2, %c0_3] : memref<256x256xbf16, #tpu.memory_space<vmem>>, vector<256x256xbf16>
    %c0_4 = arith.constant 0 : index
    %c0_5 = arith.constant 0 : index
    %5 = vector.load %arg3[%c0_4, %c0_5] : memref<256x128xbf16, #tpu.memory_space<vmem>>, vector<256x128xbf16>
    %cst = arith.constant dense<0.000000e+00> : vector<256x128xf32>
    %6 = tpu.matmul %4, %5, %cst {dimension_numbers = #tpu.dot_dimension_numbers<[1], [0], [0], [1], [0, 0, 1, 1], [], []>} : vector<256x256xbf16>, vector<256x128xbf16>, vector<256x128xf32> -> vector<256x128xf32>
    %7 = arith.addf %3, %6 : vector<256x128xf32>
    %c0_6 = arith.constant 0 : index
    %c0_7 = arith.constant 0 : index
    %8 = vector.load %arg5[%c0_6, %c0_7] : memref<256x128xf32, #tpu.memory_space<vmem>>, vector<256x128xf32>
    tpu.vector_store %arg5[%c0_6, %c0_7], %7 {strides = array<i32>} : memref<256x128xf32, #tpu.memory_space<vmem>>, vector<256x128xf32>,
    %c0_i32_8 = arith.constant 0 : i32
    %9 = arith.cmpi eq, %arg1, %c0_i32_8 : i32
    %10 = arith.extui %9 : i1 to i32
    %c0_i32_9 = arith.constant 0 : i32
    %11 = arith.cmpi ne, %10, %c0_i32_9 : i32
    scf.if %11 {
      %c0_10 = arith.constant 0 : index
      %c0_11 = arith.constant 0 : index
      %12 = vector.load %arg5[%c0_10, %c0_11] : memref<256x128xf32, #tpu.memory_space<vmem>>, vector<256x128xf32>
      %c0_12 = arith.constant 0 : index
      %c0_13 = arith.constant 0 : index
      %13 = vector.load %arg4[%c0_12, %c0_13] : memref<1x128xf32, #tpu.memory_space<vmem>>, vector<1x128xf32>
      %14 = vector.broadcast %13 : vector<1x128xf32> to vector<256x128xf32>
      %15 = arith.addf %12, %14 : vector<256x128xf32>
      %c0_14 = arith.constant 0 : index
      %c0_15 = arith.constant 0 : index
      %16 = vector.load %arg5[%c0_14, %c0_15] : memref<256x128xf32, #tpu.memory_space<vmem>>, vector<256x128xf32>
      tpu.vector_store %arg5[%c0_14, %c0_15], %15 {strides = array<i32>} : memref<256x128xf32, #tpu.memory_space<vmem>>, vector<256x128xf32>,
    } else {
    }
    return
  }
  func.func @transform_0(%arg0: i32, %arg1: i32) -> (i32, i32) {
    %c0_i32 = arith.constant 0 : i32
    return %arg0, %arg1 : i32, i32
  }
  func.func @transform_1(%arg0: i32, %arg1: i32) -> (i32, i32) {
    %c0_i32 = arith.constant 0 : i32
    %c0_i32_0 = arith.constant 0 : i32
    return %arg1, %c0_i32 : i32, i32
  }
  func.func @transform_2(%arg0: i32, %arg1: i32) -> (i32, i32) {
    %c0_i32 = arith.constant 0 : i32
    %c0_i32_0 = arith.constant 0 : i32
    %c0_i32_1 = arith.constant 0 : i32
    return %c0_i32, %c0_i32_0 : i32, i32
  }
  func.func @transform_3(%arg0: i32, %arg1: i32) -> (i32, i32) {
    %c0_i32 = arith.constant 0 : i32
    %c0_i32_0 = arith.constant 0 : i32
    return %arg0, %c0_i32 : i32, i32
  }
}

</mosaic_0001>

<bundles_post_ra>
// kernel: tpu_custom_call.1
= control target key start
LH: loop header
LB: loop body
LE: loop exit
PB: predicated region body
PF: predicated region fallthrough
CT: control target
= control target key end

     0   :  { %8 = vsyncpa [#allocation3], 0  ;;  %s1222_s0 = inlined_call_operand.hbm [shape: bf16[256,256], index: 0, kind: input, shape index: {}]   ;;  %s1223_s1 = inlined_call_operand.hbm [shape: bf16[256,128], index: 1, kind: input, shape index: {}]   ;;  %s1224_s2 = inlined_call_operand.vmem [shape: f32[1,128], index: 2, kind: input, shape index: {}]   ;;  %s1225_s3 = inlined_call_operand.hbm [shape: f32[256,128], index: 3, kind: output, shape index: {}]  }
   0x1   :  { %9 = vsyncpa [#allocation6], 0 }
   0x2   :  { %10 = vsyncpa [#allocation4], 0  ;;  %s15_s14 = sshll.u32 %s1222_s0, 4  ;;  %s1143_s15 = smov [#allocation2]   ;;  %s16_s14 = int_to_ptr.hbm [resolvable:$true] %s15_s14 }
   0x3   :  { %s17_s16 = sshll.u32 %s1143_s15, 4  ;;  %s28_s19 = sshll.u32 %s1223_s1, 4  ;;  %s18_s16 = int_to_ptr.vmem [resolvable:$true] %s17_s16  ;;  %s29_s19 = int_to_ptr.hbm [resolvable:$true] %s28_s19 }
   0x4   :  { %s1144_s20 = smov 128   ;;  %s1145_s21 = smov 8  }
   0x5   :  { %23 = dma.hbm_to_vmem [thread:$0]  %s16_s14, 4096, %s18_s16, [#allocation3], %s1144_s20, %s1144_s20, %s1145_s21  }
   0x6   :  { %s1146_s22 = smov [#allocation5]   ;;  %s1147_s24 = smov 64  }
   0x7   :  { %s30_s23 = sshll.u32 %s1146_s22, 4  ;;  %s1148_s0 = smov 4   ;;  %s31_s23 = int_to_ptr.vmem [resolvable:$true] %s30_s23 }
   0x8   :  { %36 = dma.hbm_to_vmem [thread:$0]  %s29_s19, 2048, %s31_s23, [#allocation6], %s1147_s24, %s1147_s24, %s1148_s0  }
   0x9   :  { %1137 = dma.done.wait [#allocation3], 4096  }
   0xa   :  { %1138 = vsyncadd [#allocation3], 4294963200 }
   0xb   :  { %1139 = dma.done.wait [#allocation6], 2048  }
   0xc   :  { %1140 = vsyncadd [#allocation6], 4294965248  ;;  %v1031_v0 = vld [vmem:[#allocation5 + $0x38] sm:$0xff]  ;;  %v1030_v2 = vld [vmem:[#allocation5 + $0x30] sm:$0xff]  ;;  %s786_s29 = sshll.u32 %s1225_s3, 4  ;;  %s787_s29 = int_to_ptr.hbm [resolvable:$true] %s786_s29 }
   0xd   :  { %v1039_v1 = vld [vmem:[#allocation5 + $0x78] sm:$0xff]  ;;  %435 = vmatpush.bf16.msra.mxu0 %v1031_v0  ;;  %1040 = vmatpush.bf16.msra.mxu2 %v1031_v0  ;;  %v1038_v3 = vld [vmem:[#allocation5 + $0x70] sm:$0xff]  ;;  %v1029_v4 = vld [vmem:[#allocation5 + $0x28] sm:$0xff] }
   0xe   :  { %524 = vmatpush.bf16.msra.mxu1 %v1039_v1  ;;  %1048 = vmatpush.bf16.msra.mxu3 %v1039_v1  ;;  %v1037_v5 = vld [vmem:[#allocation5 + $0x68] sm:$0xff]  ;;  %v1028_v6 = vld [vmem:[#allocation5 + $0x20] sm:$0xff]  ;;  %v1027_v8 = vld [vmem:[#allocation5 + $0x18] sm:$0xff] }
   0xf   :  { %v1036_v7 = vld [vmem:[#allocation5 + $0x60] sm:$0xff]  ;;  %v1035_v9 = vld [vmem:[#allocation5 + $0x58] sm:$0xff]  ;;  %v1026_v10 = vld [vmem:[#allocation5 + $0x10] sm:$0xff] }
  0x10   :  { %v1034_v11 = vld [vmem:[#allocation5 + $0x50] sm:$0xff]  ;;  %v1025_v12 = vld [vmem:[#allocation5 + $0x8] sm:$0xff]  ;;  %v1024_v14 = vld [vmem:[#allocation5] sm:$0xff] }
  0x11   :  { %436 = vmatpush.bf16.msra.mxu0 %v1030_v2  ;;  %1041 = vmatpush.bf16.msra.mxu2 %v1030_v2  ;;  %v1033_v13 = vld [vmem:[#allocation5 + $0x48] sm:$0xff]  ;;  %v1032_v15 = vld [vmem:[#allocation5 + $0x40] sm:$0xff]  ;;  %v810_v28 = vld [vmem:[#allocation2 + $0x10] sm:$0xf] }
  0x12   :  { %525 = vmatpush.bf16.msra.mxu1 %v1038_v3  ;;  %1049 = vmatpush.bf16.msra.mxu3 %v1038_v3  ;;  %v802_v16 = vld [vmem:[#allocation2] sm:$0xf]  ;;  %v993_v17 = vld [vmem:[#allocation2 + $0x4] sm:$0xf0]  ;;  %v992_v20 = vld [vmem:[#allocation2 + $0x4] sm:$0xf] }
  0x13   :  { %v866_v18 = vld [vmem:[#allocation2 + $0x80] sm:$0xf]  ;;  %v1009_v19 = vld [vmem:[#allocation2 + $0x84] sm:$0xf0]  ;;  %v804_v21 = vld [vmem:[#allocation2 + $0x8] sm:$0xf0]  ;;  %v803_v24 = vor.u32 %v993_v17, %v802_v16 }
  0x14   :  { %v1008_v22 = vld [vmem:[#allocation2 + $0x84] sm:$0xf]  ;;  %v868_v23 = vld [vmem:[#allocation2 + $0x88] sm:$0xf0]  ;;  %v867_v25 = vor.u32 %v1009_v19, %v866_v18  ;;  %v807_v26 = vor.u32 %v992_v20, %v804_v21  ;;  %v995_v29 = vld [vmem:[#allocation2 + $0x14] sm:$0xf0] }
  0x15   :  { %437 = vmatpush.bf16.msra.mxu0 %v1029_v4  ;;  %1042 = vmatpush.bf16.msra.mxu2 %v1029_v4  ;;  %v871_v27 = vor.u32 %v1008_v22, %v868_v23  ;;  %v874_v30 = vld [vmem:[#allocation2 + $0x90] sm:$0xf]  ;;  %v1011_v31 = vld [vmem:[#allocation2 + $0x94] sm:$0xf0]  ;;  %v994_v32 = vld [vmem:[#allocation2 + $0x14] sm:$0xf]  ;;  %v811_v36 = vor.u32 %v995_v29, %v810_v28 }
  0x16   :  { %526 = vmatpush.bf16.msra.mxu1 %v1037_v5  ;;  %1050 = vmatpush.bf16.msra.mxu3 %v1037_v5  ;;  %v812_v33 = vld [vmem:[#allocation2 + $0x18] sm:$0xf0]  ;;  %v1010_v34 = vld [vmem:[#allocation2 + $0x94] sm:$0xf]  ;;  %v875_v37 = vor.u32 %v1011_v31, %v874_v30  ;;  %v818_v40 = vld [vmem:[#allocation2 + $0x20] sm:$0xf] }
  0x17   :  { %v876_v35 = vld [vmem:[#allocation2 + $0x98] sm:$0xf0]  ;;  %v815_v38 = vor.u32 %v994_v32, %v812_v33  ;;  %v997_v41 = vld [vmem:[#allocation2 + $0x24] sm:$0xf0]  ;;  %v882_v42 = vld [vmem:[#allocation2 + $0xa0] sm:$0xf] }
  0x18   :  { %v879_v39 = vor.u32 %v1010_v34, %v876_v35  ;;  %v1013_v43 = vld [vmem:[#allocation2 + $0xa4] sm:$0xf0]  ;;  %v996_v44 = vld [vmem:[#allocation2 + $0x24] sm:$0xf]  ;;  %v820_v45 = vld [vmem:[#allocation2 + $0x28] sm:$0xf0]  ;;  %v819_v48 = vor.u32 %v997_v41, %v818_v40 }
  0x19   :  { %438 = vmatpush.bf16.msra.mxu0 %v1028_v6  ;;  %1043 = vmatpush.bf16.msra.mxu2 %v1028_v6  ;;  %v1012_v46 = vld [vmem:[#allocation2 + $0xa4] sm:$0xf]  ;;  %v884_v47 = vld [vmem:[#allocation2 + $0xa8] sm:$0xf0]  ;;  %v883_v49 = vor.u32 %v1013_v43, %v882_v42  ;;  %v823_v50 = vor.u32 %v996_v44, %v820_v45  ;;  %v826_v52 = vld [vmem:[#allocation2 + $0x30] sm:$0xf] }
  0x1a   :  { %527 = vmatpush.bf16.msra.mxu1 %v1036_v7  ;;  %1051 = vmatpush.bf16.msra.mxu3 %v1036_v7  ;;  %v887_v51 = vor.u32 %v1012_v46, %v884_v47  ;;  %v999_v53 = vld [vmem:[#allocation2 + $0x34] sm:$0xf0]  ;;  %v890_v54 = vld [vmem:[#allocation2 + $0xb0] sm:$0xf]  ;;  %v998_v56 = vld [vmem:[#allocation2 + $0x34] sm:$0xf] }
  0x1b   :  { %v1015_v55 = vld [vmem:[#allocation2 + $0xb4] sm:$0xf0]  ;;  %v828_v57 = vld [vmem:[#allocation2 + $0x38] sm:$0xf0]  ;;  %v1014_v58 = vld [vmem:[#allocation2 + $0xb4] sm:$0xf]  ;;  %v827_v60 = vor.u32 %v999_v53, %v826_v52 }
  0x1c   :  { %v892_v59 = vld [vmem:[#allocation2 + $0xb8] sm:$0xf0]  ;;  %v891_v61 = vor.u32 %v1015_v55, %v890_v54  ;;  %v831_v62 = vor.u32 %v998_v56, %v828_v57  ;;  %v834_v0 = vld [vmem:[#allocation2 + $0x40] sm:$0xf]  ;;  %v1001_v1 = vld [vmem:[#allocation2 + $0x44] sm:$0xf0] }
  0x1d   :  { %439 = vmatpush.bf16.msra.mxu0 %v1027_v8  ;;  %1044 = vmatpush.bf16.msra.mxu2 %v1027_v8  ;;  %v895_v63 = vor.u32 %v1014_v58, %v892_v59  ;;  %v898_v2 = vld [vmem:[#allocation2 + $0xc0] sm:$0xf]  ;;  %v1017_v3 = vld [vmem:[#allocation2 + $0xc4] sm:$0xf0]  ;;  %v1000_v4 = vld [vmem:[#allocation2 + $0x44] sm:$0xf]  ;;  %v835_v8 = vor.u32 %v1001_v1, %v834_v0 }
  0x1e   :  { %528 = vmatpush.bf16.msra.mxu1 %v1035_v9  ;;  %1052 = vmatpush.bf16.msra.mxu3 %v1035_v9  ;;  %v836_v5 = vld [vmem:[#allocation2 + $0x48] sm:$0xf0]  ;;  %v1016_v6 = vld [vmem:[#allocation2 + $0xc4] sm:$0xf]  ;;  %v899_v9 = vor.u32 %v1017_v3, %v898_v2  ;;  %v1002_v16 = vld [vmem:[#allocation2 + $0x54] sm:$0xf] }
  0x1f   :  { %v900_v7 = vld [vmem:[#allocation2 + $0xc8] sm:$0xf0]  ;;  %v844_v17 = vld [vmem:[#allocation2 + $0x58] sm:$0xf0]  ;;  %v1018_v18 = vld [vmem:[#allocation2 + $0xd4] sm:$0xf] }
  0x20   :  { %v908_v19 = vld [vmem:[#allocation2 + $0xd8] sm:$0xf0]  ;;  %v847_v22 = vor.u32 %v1002_v16, %v844_v17  ;;  %v1004_v28 = vld [vmem:[#allocation2 + $0x64] sm:$0xf]  ;;  %v852_v29 = vld [vmem:[#allocation2 + $0x68] sm:$0xf0] }
  0x21   :  { %440 = vmatpush.bf16.msra.mxu0 %v1026_v10  ;;  %1045 = vmatpush.bf16.msra.mxu2 %v1026_v10  ;;  %v839_v10 = vor.u32 %v1000_v4, %v836_v5  ;;  %v911_v23 = vor.u32 %v1018_v18, %v908_v19  ;;  %v1020_v30 = vld [vmem:[#allocation2 + $0xe4] sm:$0xf]  ;;  %v916_v31 = vld [vmem:[#allocation2 + $0xe8] sm:$0xf0]  ;;  %v855_v34 = vor.u32 %v1004_v28, %v852_v29  ;;  %v1006_v40 = vld [vmem:[#allocation2 + $0x74] sm:$0xf] }
  0x22   :  { %529 = vmatpush.bf16.msra.mxu1 %v1034_v11  ;;  %1053 = vmatpush.bf16.msra.mxu3 %v1034_v11  ;;  %v903_v11 = vor.u32 %v1016_v6, %v900_v7  ;;  %v919_v35 = vor.u32 %v1020_v30, %v916_v31  ;;  %v860_v41 = vld [vmem:[#allocation2 + $0x78] sm:$0xf0]  ;;  %v1022_v42 = vld [vmem:[#allocation2 + $0xf4] sm:$0xf] }
  0x23   :  { %v924_v43 = vld [vmem:[#allocation2 + $0xf8] sm:$0xf0]  ;;  %v863_v46 = vor.u32 %v1006_v40, %v860_v41 }
  0x24   :  { %v927_v47 = vor.u32 %v1022_v42, %v924_v43 }
  0x25   :  { %441 = vmatpush.bf16.msra.mxu0 %v1025_v12  ;;  %1046 = vmatpush.bf16.msra.mxu2 %v1025_v12  ;;  %v842_v12 = vld [vmem:[#allocation2 + $0x50] sm:$0xf] }
  0x26   :  { %530 = vmatpush.bf16.msra.mxu1 %v1033_v13  ;;  %1054 = vmatpush.bf16.msra.mxu3 %v1033_v13  ;;  %v1003_v13 = vld [vmem:[#allocation2 + $0x54] sm:$0xf0] }
  0x27   :  { %v843_v20 = vor.u32 %v1003_v13, %v842_v12 }
  0x29   :  { %442 = vmatpush.bf16.msra.mxu0 %v1024_v14  ;;  %1047 = vmatpush.bf16.msra.mxu2 %v1024_v14  ;;  %v906_v14 = vld [vmem:[#allocation2 + $0xd0] sm:$0xf] }
  0x2a   :  { %531 = vmatpush.bf16.msra.mxu1 %v1032_v15  ;;  %1055 = vmatpush.bf16.msra.mxu3 %v1032_v15  ;;  %v1019_v15 = vld [vmem:[#allocation2 + $0xd4] sm:$0xf0] }
  0x2b   :  { %v907_v21 = vor.u32 %v1019_v15, %v906_v14 }
  0x2c   :  { %443 = vmatmul.bf16.vlgmr.msra.gmra.mxu0 %v803_v24  ;;  %483 = vmatmul.bf16.vlgmr.msra.gmra.mxu2 %v867_v25  ;;  %v850_v24 = vld [vmem:[#allocation2 + $0x60] sm:$0xf]  ;;  %v1005_v25 = vld [vmem:[#allocation2 + $0x64] sm:$0xf0] }
  0x2d   :  { %532 = vmatmul.bf16.vlgmr.msra.gmra.mxu1 %v807_v26  ;;  %572 = vmatmul.bf16.vlgmr.msra.gmra.mxu3 %v871_v27  ;;  %v914_v26 = vld [vmem:[#allocation2 + $0xe0] sm:$0xf]  ;;  %v1021_v27 = vld [vmem:[#allocation2 + $0xe4] sm:$0xf0]  ;;  %v851_v32 = vor.u32 %v1005_v25, %v850_v24 }
  0x2e   :  { %v915_v33 = vor.u32 %v1021_v27, %v914_v26 }
  0x3c   :  { %448 = vmatmul.bf16.gmra.mxu0 %v811_v36  ;;  %488 = vmatmul.bf16.gmra.mxu2 %v875_v37  ;;  %v858_v36 = vld [vmem:[#allocation2 + $0x70] sm:$0xf]  ;;  %v1007_v37 = vld [vmem:[#allocation2 + $0x74] sm:$0xf0] }
  0x3d   :  { %537 = vmatmul.bf16.gmra.mxu1 %v815_v38  ;;  %577 = vmatmul.bf16.gmra.mxu3 %v879_v39  ;;  %v922_v38 = vld [vmem:[#allocation2 + $0xf0] sm:$0xf]  ;;  %v1023_v39 = vld [vmem:[#allocation2 + $0xf4] sm:$0xf0]  ;;  %v859_v44 = vor.u32 %v1007_v37, %v858_v36 }
  0x3e   :  { %v923_v45 = vor.u32 %v1023_v39, %v922_v38 }
  0x4c   :  { %453 = vmatmul.bf16.gmra.mxu0 %v819_v48  ;;  %493 = vmatmul.bf16.gmra.mxu2 %v883_v49 }
  0x4d   :  { %542 = vmatmul.bf16.gmra.mxu1 %v823_v50  ;;  %582 = vmatmul.bf16.gmra.mxu3 %v887_v51  ;;  %v1182_v51 = vld [vmem:[%s1224_s2] ss:$0 sm:$0xff]  ;;  %s1149_s2 = smov [#allocation7]  }
  0x4e   :  { %s784_s26 = sshll.u32 %s1149_s2, 4  ;;  %s785_s26 = int_to_ptr.vmem [resolvable:$true] %s784_s26 }
  0x5c   :  { %458 = vmatmul.bf16.gmra.mxu0 %v827_v60  ;;  %498 = vmatmul.bf16.gmra.mxu2 %v891_v61 }
  0x5d   :  { %547 = vmatmul.bf16.gmra.mxu1 %v831_v62  ;;  %587 = vmatmul.bf16.gmra.mxu3 %v895_v63 }
  0x6c   :  { %463 = vmatmul.bf16.gmra.mxu0 %v835_v8  ;;  %503 = vmatmul.bf16.gmra.mxu2 %v899_v9 }
  0x6d   :  { %552 = vmatmul.bf16.gmra.mxu1 %v839_v10  ;;  %592 = vmatmul.bf16.gmra.mxu3 %v903_v11 }
  0x7c   :  { %468 = vmatmul.bf16.gmra.mxu0 %v843_v20  ;;  %508 = vmatmul.bf16.gmra.mxu2 %v907_v21 }
  0x7d   :  { %557 = vmatmul.bf16.gmra.mxu1 %v847_v22  ;;  %597 = vmatmul.bf16.gmra.mxu3 %v911_v23 }
  0x8c   :  { %473 = vmatmul.bf16.gmra.mxu0 %v851_v32  ;;  %513 = vmatmul.bf16.gmra.mxu2 %v915_v33 }
  0x8d   :  { %562 = vmatmul.bf16.gmra.mxu1 %v855_v34  ;;  %602 = vmatmul.bf16.gmra.mxu3 %v919_v35 }
  0x9c   :  { %478 = vmatmul.bf16.gmra.mxu0 %v859_v44  ;;  %518 = vmatmul.bf16.gmra.mxu2 %v923_v45 }
  0x9d   :  { %567 = vmatmul.bf16.gmra.mxu1 %v863_v46  ;;  %607 = vmatmul.bf16.gmra.mxu3 %v927_v47 }
  0xa9   :  { %v444_v48 = vpop.f32.mrf.mxu0 }
  0xaa   :  { %v533_v49 = vpop.f32.mrf.mxu1 }
  0xab   :  { %v534_v50 = vadd.f32 %v533_v49, %v444_v48 }
  0xad   :  { %v716_v52 = vadd.f32 %v1182_v51, %v534_v50 }
  0xaf   :  { %v484_v53 = vpop.f32.mrf.mxu2  ;;  %748 = vst [vmem:[#allocation7] sm:$0xff] %v716_v52 }
  0xb0   :  { %v573_v54 = vpop.f32.mrf.mxu3 }
  0xb1   :  { %v574_v55 = vadd.f32 %v573_v54, %v484_v53  ;;  %v446_v56 = vpop.f32.mrf.mxu0 }
  0xb2   :  { %v535_v57 = vpop.f32.mrf.mxu1 }
  0xb3   :  { %v536_v58 = vadd.f32 %v535_v57, %v446_v56  ;;  %v732_v59 = vadd.f32 %v1182_v51, %v574_v55 }
  0xb5   :  { %764 = vst [vmem:[#allocation7 + $0x80] sm:$0xff] %v732_v59  ;;  %v717_v60 = vadd.f32 %v1182_v51, %v536_v58 }
  0xb7   :  { %v486_v61 = vpop.f32.mrf.mxu2  ;;  %749 = vst [vmem:[#allocation7 + $0x8] sm:$0xff] %v717_v60 }
  0xb8   :  { %v575_v62 = vpop.f32.mrf.mxu3 }
  0xb9   :  { %v576_v63 = vadd.f32 %v575_v62, %v486_v61  ;;  %v449_v0 = vpop.f32.mrf.mxu0 }
  0xba   :  { %v538_v1 = vpop.f32.mrf.mxu1 }
  0xbb   :  { %v539_v2 = vadd.f32 %v538_v1, %v449_v0  ;;  %v733_v3 = vadd.f32 %v1182_v51, %v576_v63 }
  0xbd   :  { %765 = vst [vmem:[#allocation7 + $0x88] sm:$0xff] %v733_v3  ;;  %v718_v4 = vadd.f32 %v1182_v51, %v539_v2 }
  0xbf   :  { %v489_v5 = vpop.f32.mrf.mxu2  ;;  %750 = vst [vmem:[#allocation7 + $0x10] sm:$0xff] %v718_v4 }
  0xc0   :  { %v578_v6 = vpop.f32.mrf.mxu3 }
  0xc1   :  { %v579_v7 = vadd.f32 %v578_v6, %v489_v5  ;;  %v451_v8 = vpop.f32.mrf.mxu0 }
  0xc2   :  { %v540_v9 = vpop.f32.mrf.mxu1 }
  0xc3   :  { %v541_v10 = vadd.f32 %v540_v9, %v451_v8  ;;  %v734_v11 = vadd.f32 %v1182_v51, %v579_v7 }
  0xc5   :  { %766 = vst [vmem:[#allocation7 + $0x90] sm:$0xff] %v734_v11  ;;  %v719_v12 = vadd.f32 %v1182_v51, %v541_v10 }
  0xc7   :  { %v491_v13 = vpop.f32.mrf.mxu2  ;;  %751 = vst [vmem:[#allocation7 + $0x18] sm:$0xff] %v719_v12 }
  0xc8   :  { %v580_v14 = vpop.f32.mrf.mxu3 }
  0xc9   :  { %v581_v15 = vadd.f32 %v580_v14, %v491_v13  ;;  %v454_v16 = vpop.f32.mrf.mxu0 }
  0xca   :  { %v543_v17 = vpop.f32.mrf.mxu1 }
  0xcb   :  { %v544_v18 = vadd.f32 %v543_v17, %v454_v16  ;;  %v735_v19 = vadd.f32 %v1182_v51, %v581_v15 }
  0xcd   :  { %767 = vst [vmem:[#allocation7 + $0x98] sm:$0xff] %v735_v19  ;;  %v720_v20 = vadd.f32 %v1182_v51, %v544_v18 }
  0xcf   :  { %v494_v21 = vpop.f32.mrf.mxu2  ;;  %752 = vst [vmem:[#allocation7 + $0x20] sm:$0xff] %v720_v20 }
  0xd0   :  { %v583_v22 = vpop.f32.mrf.mxu3 }
  0xd1   :  { %v584_v23 = vadd.f32 %v583_v22, %v494_v21  ;;  %v456_v24 = vpop.f32.mrf.mxu0 }
  0xd2   :  { %v545_v25 = vpop.f32.mrf.mxu1 }
  0xd3   :  { %v546_v26 = vadd.f32 %v545_v25, %v456_v24  ;;  %v736_v27 = vadd.f32 %v1182_v51, %v584_v23 }
  0xd5   :  { %768 = vst [vmem:[#allocation7 + $0xa0] sm:$0xff] %v736_v27  ;;  %v721_v28 = vadd.f32 %v1182_v51, %v546_v26 }
  0xd7   :  { %v496_v29 = vpop.f32.mrf.mxu2  ;;  %753 = vst [vmem:[#allocation7 + $0x28] sm:$0xff] %v721_v28 }
  0xd8   :  { %v585_v30 = vpop.f32.mrf.mxu3 }
  0xd9   :  { %v586_v31 = vadd.f32 %v585_v30, %v496_v29  ;;  %v459_v32 = vpop.f32.mrf.mxu0 }
  0xda   :  { %v548_v33 = vpop.f32.mrf.mxu1 }
  0xdb   :  { %v549_v34 = vadd.f32 %v548_v33, %v459_v32  ;;  %v737_v35 = vadd.f32 %v1182_v51, %v586_v31 }
  0xdd   :  { %769 = vst [vmem:[#allocation7 + $0xa8] sm:$0xff] %v737_v35  ;;  %v722_v36 = vadd.f32 %v1182_v51, %v549_v34 }
  0xdf   :  { %v499_v37 = vpop.f32.mrf.mxu2  ;;  %754 = vst [vmem:[#allocation7 + $0x30] sm:$0xff] %v722_v36 }
  0xe0   :  { %v588_v38 = vpop.f32.mrf.mxu3 }
  0xe1   :  { %v589_v39 = vadd.f32 %v588_v38, %v499_v37  ;;  %v461_v40 = vpop.f32.mrf.mxu0 }
  0xe2   :  { %v550_v41 = vpop.f32.mrf.mxu1 }
  0xe3   :  { %v551_v42 = vadd.f32 %v550_v41, %v461_v40  ;;  %v738_v43 = vadd.f32 %v1182_v51, %v589_v39 }
  0xe5   :  { %770 = vst [vmem:[#allocation7 + $0xb0] sm:$0xff] %v738_v43  ;;  %v723_v44 = vadd.f32 %v1182_v51, %v551_v42 }
  0xe7   :  { %v501_v45 = vpop.f32.mrf.mxu2  ;;  %755 = vst [vmem:[#allocation7 + $0x38] sm:$0xff] %v723_v44 }
  0xe8   :  { %v590_v46 = vpop.f32.mrf.mxu3 }
  0xe9   :  { %v591_v47 = vadd.f32 %v590_v46, %v501_v45  ;;  %v464_v48 = vpop.f32.mrf.mxu0 }
  0xea   :  { %v553_v49 = vpop.f32.mrf.mxu1 }
  0xeb   :  { %v554_v50 = vadd.f32 %v553_v49, %v464_v48  ;;  %v739_v52 = vadd.f32 %v1182_v51, %v591_v47 }
  0xed   :  { %771 = vst [vmem:[#allocation7 + $0xb8] sm:$0xff] %v739_v52  ;;  %v724_v53 = vadd.f32 %v1182_v51, %v554_v50 }
  0xef   :  { %v504_v54 = vpop.f32.mrf.mxu2  ;;  %756 = vst [vmem:[#allocation7 + $0x40] sm:$0xff] %v724_v53 }
  0xf0   :  { %v593_v55 = vpop.f32.mrf.mxu3 }
  0xf1   :  { %v594_v56 = vadd.f32 %v593_v55, %v504_v54  ;;  %v466_v57 = vpop.f32.mrf.mxu0 }
  0xf2   :  { %v555_v58 = vpop.f32.mrf.mxu1 }
  0xf3   :  { %v556_v59 = vadd.f32 %v555_v58, %v466_v57  ;;  %v740_v60 = vadd.f32 %v1182_v51, %v594_v56 }
  0xf5   :  { %772 = vst [vmem:[#allocation7 + $0xc0] sm:$0xff] %v740_v60  ;;  %v725_v61 = vadd.f32 %v1182_v51, %v556_v59 }
  0xf7   :  { %v506_v62 = vpop.f32.mrf.mxu2  ;;  %757 = vst [vmem:[#allocation7 + $0x48] sm:$0xff] %v725_v61 }
  0xf8   :  { %v595_v63 = vpop.f32.mrf.mxu3 }
  0xf9   :  { %v596_v0 = vadd.f32 %v595_v63, %v506_v62  ;;  %v469_v1 = vpop.f32.mrf.mxu0 }
  0xfa   :  { %v558_v2 = vpop.f32.mrf.mxu1 }
  0xfb   :  { %v559_v3 = vadd.f32 %v558_v2, %v469_v1  ;;  %v741_v4 = vadd.f32 %v1182_v51, %v596_v0 }
  0xfd   :  { %773 = vst [vmem:[#allocation7 + $0xc8] sm:$0xff] %v741_v4  ;;  %v726_v5 = vadd.f32 %v1182_v51, %v559_v3 }
  0xff   :  { %v509_v6 = vpop.f32.mrf.mxu2  ;;  %758 = vst [vmem:[#allocation7 + $0x50] sm:$0xff] %v726_v5 }
 0x100   :  { %v598_v7 = vpop.f32.mrf.mxu3 }
 0x101   :  { %v599_v8 = vadd.f32 %v598_v7, %v509_v6  ;;  %v471_v9 = vpop.f32.mrf.mxu0 }
 0x102   :  { %v560_v10 = vpop.f32.mrf.mxu1 }
 0x103   :  { %v561_v11 = vadd.f32 %v560_v10, %v471_v9  ;;  %v742_v12 = vadd.f32 %v1182_v51, %v599_v8 }
 0x105   :  { %774 = vst [vmem:[#allocation7 + $0xd0] sm:$0xff] %v742_v12  ;;  %v727_v13 = vadd.f32 %v1182_v51, %v561_v11 }
 0x107   :  { %v511_v14 = vpop.f32.mrf.mxu2  ;;  %759 = vst [vmem:[#allocation7 + $0x58] sm:$0xff] %v727_v13 }
 0x108   :  { %v600_v15 = vpop.f32.mrf.mxu3 }
 0x109   :  { %v601_v16 = vadd.f32 %v600_v15, %v511_v14  ;;  %v474_v17 = vpop.f32.mrf.mxu0 }
 0x10a   :  { %v563_v18 = vpop.f32.mrf.mxu1 }
 0x10b   :  { %v564_v19 = vadd.f32 %v563_v18, %v474_v17  ;;  %v743_v20 = vadd.f32 %v1182_v51, %v601_v16 }
 0x10d   :  { %775 = vst [vmem:[#allocation7 + $0xd8] sm:$0xff] %v743_v20  ;;  %v728_v21 = vadd.f32 %v1182_v51, %v564_v19 }
 0x10f   :  { %v514_v22 = vpop.f32.mrf.mxu2  ;;  %760 = vst [vmem:[#allocation7 + $0x60] sm:$0xff] %v728_v21 }
 0x110   :  { %v603_v23 = vpop.f32.mrf.mxu3 }
 0x111   :  { %v604_v24 = vadd.f32 %v603_v23, %v514_v22  ;;  %v476_v25 = vpop.f32.mrf.mxu0 }
 0x112   :  { %v565_v26 = vpop.f32.mrf.mxu1 }
 0x113   :  { %v566_v27 = vadd.f32 %v565_v26, %v476_v25  ;;  %v744_v28 = vadd.f32 %v1182_v51, %v604_v24 }
 0x115   :  { %776 = vst [vmem:[#allocation7 + $0xe0] sm:$0xff] %v744_v28  ;;  %v729_v29 = vadd.f32 %v1182_v51, %v566_v27 }
 0x117   :  { %v516_v30 = vpop.f32.mrf.mxu2  ;;  %761 = vst [vmem:[#allocation7 + $0x68] sm:$0xff] %v729_v29 }
 0x118   :  { %v605_v31 = vpop.f32.mrf.mxu3 }
 0x119   :  { %v606_v32 = vadd.f32 %v605_v31, %v516_v30  ;;  %v479_v33 = vpop.f32.mrf.mxu0 }
 0x11a   :  { %v568_v34 = vpop.f32.mrf.mxu1 }
 0x11b   :  { %v569_v35 = vadd.f32 %v568_v34, %v479_v33  ;;  %v745_v36 = vadd.f32 %v1182_v51, %v606_v32 }
 0x11d   :  { %777 = vst [vmem:[#allocation7 + $0xe8] sm:$0xff] %v745_v36  ;;  %v730_v37 = vadd.f32 %v1182_v51, %v569_v35 }
 0x11f   :  { %v519_v38 = vpop.f32.mrf.mxu2  ;;  %762 = vst [vmem:[#allocation7 + $0x70] sm:$0xff] %v730_v37 }
 0x120   :  { %v608_v39 = vpop.f32.mrf.mxu3 }
 0x121   :  { %v609_v40 = vadd.f32 %v608_v39, %v519_v38  ;;  %v481_v41 = vpop.f32.mrf.mxu0 }
 0x122   :  { %v570_v42 = vpop.f32.mrf.mxu1 }
 0x123   :  { %v571_v43 = vadd.f32 %v570_v42, %v481_v41  ;;  %v746_v44 = vadd.f32 %v1182_v51, %v609_v40 }
 0x125   :  { %778 = vst [vmem:[#allocation7 + $0xf0] sm:$0xff] %v746_v44  ;;  %v731_v45 = vadd.f32 %v1182_v51, %v571_v43 }
 0x127   :  { %v521_v46 = vpop.f32.mrf.mxu2  ;;  %763 = vst [vmem:[#allocation7 + $0x78] sm:$0xff] %v731_v45 }
 0x128   :  { %v610_v47 = vpop.f32.mrf.mxu3 }
 0x129   :  { %v611_v48 = vadd.f32 %v610_v47, %v521_v46 }
 0x12b   :  { %v747_v49 = vadd.f32 %v1182_v51, %v611_v48 }
 0x12d   :  { %779 = vst [vmem:[#allocation7 + $0xf8] sm:$0xff] %v747_v49 }
 0x12e   :  { %792 = dma.vmem_to_hbm [thread:$0]  %s785_s26, 4096, %s787_s29, [#allocation4], %s1144_s20, %s1144_s20, %s1145_s21  }
 0x12f   :  { %1141 = dma.done.wait [#allocation4], 4096  }
 0x130   :  { %1142 = vsyncadd [#allocation4], 4294963200 }
 0x131   :  { %797 = vsyncpa [#allocation3], 1 }
 0x132   :  { %798 = vsyncpa [#allocation6], 1 }
 0x133   :  { %799 = vsyncpa [#allocation4], 1 }

</bundles_post_ra>
